<compile_context>
chip_gen: v7x
topology: tpu7x:2x2x1
jax: 0.10.0
libtpu: 0.0.40
codegen_flags: <defaults>
</compile_context>

<pallas_src>
import numpy as np
import jax
import jax.numpy as jnp
from jax.experimental import pallas as pl
from jax.experimental.pallas import tpu as pltpu

ALPHA = 0.7      # module default
GAMMA = 0.75     # module default
SMOOTH = 1.0

_LANE = 128
_MAX_BLOCK_D = 32768        # feature-tile cap (columns); modest VMEM on all gens
_MIN_GOOD_BLOCK_D = 2048    # below this, pad up and use one big fixed tile
_NEG_FILL = -1e9            # sigmoid(-1e9) == 0.0 exactly in f32


def _partial_sums_kernel(logits_ref, targets_ref, pt_ref, sp_ref, st_ref):
    """Accumulate per-row sum(p*t), sum(p), sum(t) into (block_rows, 128) lanes."""
    k = pl.program_id(1)

    # Init the resident output accumulators on the first feature tile.
    @pl.when(k == 0)
    def _():
        pt_ref[...] = jnp.zeros_like(pt_ref)
        sp_ref[...] = jnp.zeros_like(sp_ref)
        st_ref[...] = jnp.zeros_like(st_ref)

    x = logits_ref[...].astype(jnp.float32)       # (BR, BD)
    t = targets_ref[...].astype(jnp.float32)      # (BR, BD)
    p = jax.nn.sigmoid(x)                         # probs = sigmoid(logits)
    pt = p * t

    bd = x.shape[1]
    nc = bd // _LANE

    def lane_fold(v):
        # Fold lane-tiles with lane-aligned static slices: pure VPU adds (no XLU).
        acc = v[:, 0:_LANE]
        for j in range(1, nc):
            acc = acc + v[:, j * _LANE:(j + 1) * _LANE]
        return acc

    pt_ref[...] += lane_fold(pt)
    sp_ref[...] += lane_fold(p)
    st_ref[...] += lane_fold(t)


def _choose_tiling(n, d):
    """Pick (r, rows, d_row, block_rows, block_d, d_pad) for flattened (n, d)."""
    # Sublane fill: split each sample row into r contiguous sub-rows.
    r = 1
    if n % 8 != 0:
        for cand in (8, 4, 2):
            if d % cand == 0:
                r = cand
                break
    rows = n * r
    d_row = d // r
    block_rows = 8 if rows % 8 == 0 else rows

    d_ceil = -(-d_row // _LANE) * _LANE
    max_bd = min(_MAX_BLOCK_D, d_ceil)

    # Prefer the largest lane-aligned tile that exactly divides the 128-aligned
    # width (minimal padding).
    block_d = _LANE
    for q in range(max_bd // _LANE, 0, -1):
        if d_ceil % (q * _LANE) == 0:
            block_d = q * _LANE
            break
    # Too small to amortize per-step pipeline overhead -> big fixed tile + pad.
    if block_d < min(_MIN_GOOD_BLOCK_D, max_bd):
        block_d = max_bd

    d_pad = -(-d_row // block_d) * block_d
    return r, rows, d_row, block_rows, block_d, d_pad


def focal_tversky_loss(logits, targets, alpha=ALPHA, gamma=GAMMA):
    """Pallas implementation of Focal_Tversky_Loss.forward (alpha=0.7, gamma=0.75)."""
    n = logits.shape[0]
    d = int(np.prod(logits.shape[1:]))

    r, rows, d_row, block_rows, block_d, d_pad = _choose_tiling(n, d)

    m1 = logits.reshape(rows, d_row)
    if not jnp.issubdtype(m1.dtype, jnp.floating):
        m1 = m1.astype(jnp.float32)
    # Binary masks are exact in bf16; halves target HBM traffic.
    m2 = targets.reshape(rows, d_row).astype(jnp.bfloat16)

    if d_pad != d_row:
        pad = d_pad - d_row
        # logits padded very negative -> sigmoid == 0; targets padded with 0,
        # so padded columns contribute nothing to sum(p), sum(t), sum(p*t).
        m1 = jnp.pad(m1, ((0, 0), (0, pad)), constant_values=_NEG_FILL)
        m2 = jnp.pad(m2, ((0, 0), (0, pad)), constant_values=0)

    grid = (rows // block_rows, d_pad // block_d)

    acc_spec = pl.BlockSpec((block_rows, _LANE), lambda i, k: (i, 0))
    acc_shape = jax.ShapeDtypeStruct((rows, _LANE), jnp.float32)

    pt_p, sp_p, st_p = pl.pallas_call(
        _partial_sums_kernel,
        out_shape=(acc_shape, acc_shape, acc_shape),
        grid_spec=pltpu.PrefetchScalarGridSpec(
            num_scalar_prefetch=0,
            grid=grid,
            in_specs=[
                pl.BlockSpec((block_rows, block_d), lambda i, k: (i, k)),
                pl.BlockSpec((block_rows, block_d), lambda i, k: (i, k)),
            ],
            out_specs=(acc_spec, acc_spec, acc_spec),
        ),
        compiler_params=pltpu.CompilerParams(
            dimension_semantics=("parallel", "arbitrary"),
            vmem_limit_bytes=40 * 1024 * 1024,
        ),
    )(m1, m2)

    # Tiny finalize in plain JAX: fold lanes + sub-rows back to per-sample sums.
    tp = jnp.sum(pt_p, axis=1).reshape(n, r).sum(axis=1)   # sum(p * t)     = TP
    sp = jnp.sum(sp_p, axis=1).reshape(n, r).sum(axis=1)   # sum(p)
    st = jnp.sum(st_p, axis=1).reshape(n, r).sum(axis=1)   # sum(t)
    fn = st - tp                                           # sum(t * (1-p)) = FN
    fp = sp - tp                                           # sum((1-t) * p) = FP
    score = (tp + SMOOTH) / (tp + alpha * fn + (1.0 - alpha) * fp + SMOOTH)
    return jnp.power(1.0 - jnp.sum(score) / n, gamma)


def _reference_loss(logits, targets):
    """Plain JAX reference mirroring the PyTorch forward exactly."""
    num = logits.shape[0]
    probs = jax.nn.sigmoid(logits.astype(jnp.float32))
    m1 = probs.reshape(num, -1)
    m2 = targets.astype(jnp.float32).reshape(num, -1)
    tp = jnp.sum(m1 * m2, axis=1)
    fn = jnp.sum(m2 * (1.0 - m1), axis=1)
    fp = jnp.sum((1.0 - m2) * m1, axis=1)
    score = (tp + SMOOTH) / (tp + ALPHA * fn + (1.0 - ALPHA) * fp + SMOOTH)
    return jnp.power(1.0 - jnp.sum(score) / num, GAMMA)


if __name__ == "__main__":
    key = jax.random.PRNGKey(0)
    k1, k2 = jax.random.split(key)

    # Small NCHW shapes: batch=2, channels=4, spatial=16x16.
    logits = jax.random.normal(k1, (2, 4, 16, 16), dtype=jnp.float32)
    targets = jax.random.bernoulli(k2, 0.5, (2, 4, 16, 16)).astype(jnp.float32)

    loss = jax.block_until_ready(focal_tversky_loss(logits, targets))
    ref = jax.block_until_ready(_reference_loss(logits, targets))

    np.testing.assert_allclose(np.asarray(loss), np.asarray(ref),
                               rtol=1e-5, atol=1e-5)
    print("KERNEL_OK")
</pallas_src>

<mosaic_0001>
module attributes {stable_mosaic.version = 11 : i64} {
  func.func @_partial_sums_kernel(%arg0: i32, %arg1: i32, %arg2: memref<8x128xf32, #tpu.memory_space<vmem>>, %arg3: memref<8x128xbf16, #tpu.memory_space<vmem>>, %arg4: memref<8x128xf32, #tpu.memory_space<vmem>>, %arg5: memref<8x128xf32, #tpu.memory_space<vmem>>, %arg6: memref<8x128xf32, #tpu.memory_space<vmem>>) attributes {dimension_semantics = [#tpu.dimension_semantics<parallel>, #tpu.dimension_semantics<arbitrary>], iteration_bounds = array<i64: 2, 1>, scalar_prefetch = 0 : i64, scratch_operands = 0 : i64, tpu.core_type = #tpu.core_type<tc>, window_params = [{transform_indices = @transform_0, window_bounds = array<i64: 8, 128>}, {transform_indices = @transform_1, window_bounds = array<i64: 8, 128>}, {transform_indices = @transform_2, window_bounds = array<i64: 8, 128>}, {transform_indices = @transform_3, window_bounds = array<i64: 8, 128>}, {transform_indices = @transform_4, window_bounds = array<i64: 8, 128>}]} {
    %c0_i32 = arith.constant 0 : i32
    %0 = arith.cmpi eq, %arg1, %c0_i32 : i32
    %1 = arith.extui %0 : i1 to i32
    %c0_i32_0 = arith.constant 0 : i32
    %2 = arith.cmpi ne, %1, %c0_i32_0 : i32
    scf.if %2 {
      %cst_16 = arith.constant 0.000000e+00 : f32
      %21 = vector.broadcast %cst_16 : f32 to vector<8x128xf32>
      %c0_17 = arith.constant 0 : index
      %c0_18 = arith.constant 0 : index
      %22 = vector.load %arg4[%c0_17, %c0_18] : memref<8x128xf32, #tpu.memory_space<vmem>>, vector<8x128xf32>
      tpu.vector_store %arg4[%c0_17, %c0_18], %21 {strides = array<i32>} : memref<8x128xf32, #tpu.memory_space<vmem>>, vector<8x128xf32>,
      %cst_19 = arith.constant 0.000000e+00 : f32
      %23 = vector.broadcast %cst_19 : f32 to vector<8x128xf32>
      %c0_20 = arith.constant 0 : index
      %c0_21 = arith.constant 0 : index
      %24 = vector.load %arg5[%c0_20, %c0_21] : memref<8x128xf32, #tpu.memory_space<vmem>>, vector<8x128xf32>
      tpu.vector_store %arg5[%c0_20, %c0_21], %23 {strides = array<i32>} : memref<8x128xf32, #tpu.memory_space<vmem>>, vector<8x128xf32>,
      %cst_22 = arith.constant 0.000000e+00 : f32
      %25 = vector.broadcast %cst_22 : f32 to vector<8x128xf32>
      %c0_23 = arith.constant 0 : index
      %c0_24 = arith.constant 0 : index
      %26 = vector.load %arg6[%c0_23, %c0_24] : memref<8x128xf32, #tpu.memory_space<vmem>>, vector<8x128xf32>
      tpu.vector_store %arg6[%c0_23, %c0_24], %25 {strides = array<i32>} : memref<8x128xf32, #tpu.memory_space<vmem>>, vector<8x128xf32>,
    } else {
    }
    %c0 = arith.constant 0 : index
    %c0_1 = arith.constant 0 : index
    %3 = vector.load %arg2[%c0, %c0_1] : memref<8x128xf32, #tpu.memory_space<vmem>>, vector<8x128xf32>
    %c0_2 = arith.constant 0 : index
    %c0_3 = arith.constant 0 : index
    %4 = vector.load %arg3[%c0_2, %c0_3] : memref<8x128xbf16, #tpu.memory_space<vmem>>, vector<8x128xbf16>
    %5 = arith.extf %4 : vector<8x128xbf16> to vector<8x128xf32>
    %6 = arith.negf %3 : vector<8x128xf32>
    %7 = math.exp %6 : vector<8x128xf32>
    %cst = arith.constant 1.000000e+00 : f32
    %8 = vector.broadcast %cst : f32 to vector<8x128xf32>
    %9 = arith.addf %8, %7 : vector<8x128xf32>
    %10 = arith.divf %8, %9 : vector<8x128xf32>
    %11 = arith.mulf %10, %5 : vector<8x128xf32>
    %c0_4 = arith.constant 0 : index
    %c0_5 = arith.constant 0 : index
    %12 = vector.load %arg4[%c0_4, %c0_5] : memref<8x128xf32, #tpu.memory_space<vmem>>, vector<8x128xf32>
    %13 = arith.addf %12, %11 : vector<8x128xf32>
    %c0_6 = arith.constant 0 : index
    %c0_7 = arith.constant 0 : index
    %14 = vector.load %arg4[%c0_6, %c0_7] : memref<8x128xf32, #tpu.memory_space<vmem>>, vector<8x128xf32>
    tpu.vector_store %arg4[%c0_6, %c0_7], %13 {strides = array<i32>} : memref<8x128xf32, #tpu.memory_space<vmem>>, vector<8x128xf32>,
    %c0_8 = arith.constant 0 : index
    %c0_9 = arith.constant 0 : index
    %15 = vector.load %arg5[%c0_8, %c0_9] : memref<8x128xf32, #tpu.memory_space<vmem>>, vector<8x128xf32>
    %16 = arith.addf %15, %10 : vector<8x128xf32>
    %c0_10 = arith.constant 0 : index
    %c0_11 = arith.constant 0 : index
    %17 = vector.load %arg5[%c0_10, %c0_11] : memref<8x128xf32, #tpu.memory_space<vmem>>, vector<8x128xf32>
    tpu.vector_store %arg5[%c0_10, %c0_11], %16 {strides = array<i32>} : memref<8x128xf32, #tpu.memory_space<vmem>>, vector<8x128xf32>,
    %c0_12 = arith.constant 0 : index
    %c0_13 = arith.constant 0 : index
    %18 = vector.load %arg6[%c0_12, %c0_13] : memref<8x128xf32, #tpu.memory_space<vmem>>, vector<8x128xf32>
    %19 = arith.addf %18, %5 : vector<8x128xf32>
    %c0_14 = arith.constant 0 : index
    %c0_15 = arith.constant 0 : index
    %20 = vector.load %arg6[%c0_14, %c0_15] : memref<8x128xf32, #tpu.memory_space<vmem>>, vector<8x128xf32>
    tpu.vector_store %arg6[%c0_14, %c0_15], %19 {strides = array<i32>} : memref<8x128xf32, #tpu.memory_space<vmem>>, vector<8x128xf32>,
    return
  }
  func.func @transform_0(%arg0: i32, %arg1: i32) -> (i32, i32) {
    %c0_i32 = arith.constant 0 : i32
    return %arg0, %arg1 : i32, i32
  }
  func.func @transform_1(%arg0: i32, %arg1: i32) -> (i32, i32) {
    %c0_i32 = arith.constant 0 : i32
    return %arg0, %arg1 : i32, i32
  }
  func.func @transform_2(%arg0: i32, %arg1: i32) -> (i32, i32) {
    %c0_i32 = arith.constant 0 : i32
    %c0_i32_0 = arith.constant 0 : i32
    return %arg0, %c0_i32 : i32, i32
  }
  func.func @transform_3(%arg0: i32, %arg1: i32) -> (i32, i32) {
    %c0_i32 = arith.constant 0 : i32
    %c0_i32_0 = arith.constant 0 : i32
    return %arg0, %c0_i32 : i32, i32
  }
  func.func @transform_4(%arg0: i32, %arg1: i32) -> (i32, i32) {
    %c0_i32 = arith.constant 0 : i32
    %c0_i32_0 = arith.constant 0 : i32
    return %arg0, %c0_i32 : i32, i32
  }
}

</mosaic_0001>

<bundles_post_ra>
// kernel: tpu_custom_call.1
= control target key start
LH: loop header
LB: loop body
LE: loop exit
PB: predicated region body
PF: predicated region fallthrough
CT: control target
= control target key end

     0   :  { %s1163_s0 = inlined_call_operand.hbm [shape: f32[16,128], index: 0, kind: input, shape index: {}]   ;;  %s1164_s1 = inlined_call_operand.hbm [shape: bf16[16,128], index: 1, kind: input, shape index: {}]   ;;  %s1165_s2 = inlined_call_operand.hbm [shape: f32[16,128], index: 2, kind: output, shape index: {0}]   ;;  %s1166_s3 = inlined_call_operand.hbm [shape: f32[16,128], index: 3, kind: output, shape index: {1}]   ;;  %s1167_s4 = inlined_call_operand.hbm [shape: f32[16,128], index: 4, kind: output, shape index: {2}]  }
   0x1   :  { %1172 = sst [smem:[#allocation15_spill]] %s1163_s0 }
   0x2   :  { %10 = vsyncpa [#allocation3], 0 }
   0x3   :  { %12 = vsyncpa [#allocation3 + $0x1], 0 }
   0x4   :  { %13 = vsyncpa [#allocation6], 0 }
   0x5   :  { %15 = vsyncpa [#allocation6 + $0x1], 0 }
   0x6   :  { %16 = vsyncpa [#allocation4], 0 }
   0x7   :  { %18 = vsyncpa [#allocation4 + $0x1], 0 }
   0x8   :  { %19 = vsyncpa [#allocation9], 0 }
   0x9   :  { %21 = vsyncpa [#allocation9 + $0x1], 0  ;;  %s869_s15 = smov 0   ;;  %s871_s16 = smov 0  }
   0xa   :  { %s873_s17 = smov 0   ;;  %s875_s18 = smov 0  }
   0xb   :  { %s877_s19 = smov 0   ;;  %s879_s20 = smov 0  }
   0xc LB: > { %s900_s21 = sadd.s32 4294967295, %s837_s20   ;;  %s1169_s22 = sadd.s32 4294967294, %s837_s20   ;;  %s837_s20 = sphi %s879_s20, %s27_s20   ;;  %s833_s19 = sphi %s877_s19, %s1193_s19   ;;  %s829_s18 = sphi %s875_s18, %s1192_s18   ;;  %s825_s17 = sphi %s873_s17, %s1191_s17   ;;  %s821_s16 = sphi %s871_s16, %s1190_s16   ;;  %s817_s15 = sphi %s869_s15, %s1189_s15  }
   0xd   : > { %s39_s23 = sadd.s32 1, %s833_s19  ;;  %s48_s24 = sadd.s32 1, %s825_s17 }
   0xe   : > { %p41_p0 = scmp.ge.s32.totalorder %s39_s23, 2  ;;  %p55_p1 = scmp.ne.s32.totalorder %s825_s17, %s821_s16 }
   0xf   : > { %p56_p2 = scmp.eq.s32.totalorder %s837_s20, 0  ;;  %p61_p3 = scmp.ne.s32.totalorder %s821_s16, %s817_s15 }
  0x10   : > { %s1195_s23 = smov (%p41_p0, %s39_s23), 0  ;;  %p62_p5 = scmp.eq.s32.totalorder %s900_s21, 0 }
  0x11   : > { %p912_p4 = por %p56_p2, %p55_p1  ;;  %s43_s26 = ssub.s32 %s833_s19, %s1195_s23 }
  0x12   : > { %p113_p6 = scmp.eq.s32.totalorder %s900_s21, 1  ;;  %p46_p7 = scmp.eq.s32.totalorder %s43_s26, 0 }
  0x13   : > { %p920_p8 = por %p62_p5, %p61_p3  ;;  %p119_p10 = scmp.eq.s32.totalorder %s1169_s22, 1 }
  0x14   : > { %p924_p9 = por %p113_p6, %p55_p1  ;;  %p576_p13 = scmp.lt.s32.totalorder %s837_s20, 2 }
  0x15   : > { %s1174_s27 = scalar_select %p920_p8, 1, 0 }
  0x16   : > { %s1175_s28 = scalar_select %p924_p9, 1, 0 }
  0x17   : > { %s931_s29 = scalar_select %p46_p7, %s825_s17, %s48_s24  }
  0x18   : > { %p933_p11 = por %p119_p10, %p61_p3  ;;  %s940_s5 = sand.u32 1, %s825_s17  }
  0x19   : > { %s530_s6 = sshll.u32 %s940_s5, 3  ;;  %s531_s7 = sshll.u32 %s833_s19, 7 }
  0x1a   : > { %s1176_s30 = scalar_select %p933_p11, 1, 0 }
  0x1b   : > { %s1177_s0 = sld [smem:[#allocation15_spill]]  ;;  %s195_s11 = scalar_lea.vmem [#allocation2], %s530_s6 }
  0x1c   : > { %s203_s12 = sshll.u32 %s195_s11, 4  ;;  %p953_p0 = pnand %p576_p13, %p912_p4  ;;  %s949_s12 = int_to_ptr.vmem [resolvable:$true] %s203_s12 }
  0x1d   : > { %s192_s14 = scalar_lea.sflag [#allocation3], %s940_s5 }
  0x1e   : > { %p633_p5 = pneg %p953_p0 }
  0x21   : > { %s947_s10 = scalar_lea.hbm %s1177_s0, %s531_s7  ;;  %s636_s25 = scalar_lea.hbm %s1177_s0, 256 }
  0x22   : > { %s631_s24 = scalar_lea.hbm %s947_s10, 128  ;;  %p637_p4 = scmp.lt.u32.totalorder %s947_s10, %s1177_s0 }
  0x23   : > { %p632_p3 = scmp.ne.s32.totalorder %s947_s10, %s631_s24  ;;  %p638_p10 = scmp.lt.u32.totalorder %s636_s25, %s631_s24 }
  0x24   : > { %p640_p12 = scmp.lt.u32.totalorder %s631_s24, %s947_s10 }
  0x25   : > { %p634_p6 = pnand %p633_p5, %p632_p3  ;;  %p639_p13 = por %p638_p10, %p637_p4 }
  0x27   : > { %p635_p7 = pneg %p634_p6  ;;  %p641_p1 = por %p640_p12, %p639_p13 }
  0x29   : > { %p642_p2 = pnand %p641_p1, %p635_p7 }
  0x2b   : > { %645 = shalt.err (!%p642_p2)
}
  0x2c   : > { %s646_s9 = scalar_lea.vmem %s949_s12, 128  ;;  %s839_s11 = smov [#allocation2]  }
  0x2d   : > { %p647_p3 = scmp.ne.s32.totalorder %s949_s12, %s646_s9  ;;  %s651_s26 = sshll.u32 %s839_s11, 4  ;;  %s652_s26 = int_to_ptr.vmem [resolvable:$false] %s651_s26 }
  0x2e   : > { %s653_s6 = scalar_lea.vmem %s652_s26, 256  ;;  %p654_p9 = scmp.lt.s32.totalorder %s949_s12, %s652_s26 }
  0x2f   : > { %p649_p6 = pnand %p647_p3, %p633_p5  ;;  %p655_p4 = scmp.lt.s32.totalorder %s653_s6, %s646_s9 }
  0x31   : > { %p650_p11 = pneg %p649_p6  ;;  %p656_p10 = por %p655_p4, %p654_p9 }
  0x33   : > { %p657_p12 = pnand %p656_p10, %p650_p11 }
  0x35   : > { %660 = shalt.err (!%p657_p12)
}
  0x36   : > { %562 = dma.hbm_to_vmem [thread:$0]  (!%p953_p0), %s947_s10, 128, %s949_s12, %s192_s14  }
  0x37   : > { %p1179_p1 = scmp.lt.s32.totalorder %s837_s20, 3  ;;  %p1180_p2 = scmp.ge.s32.totalorder %s837_s20, 1 }
  0x38   : > { %s532_s25 = sshll.u32 %s940_s5, 2  ;;  %s533_s7 = sshll.u32 %s833_s19, 6 }
  0x39   : > { %p989_p7 = pnand %p1180_p2, %p1179_p1  ;;  %s998_s11 = scalar_lea.hbm %s1164_s1, %s533_s7 }
  0x3a   : > { %s214_s26 = scalar_lea.vmem [#allocation5], %s532_s25  ;;  %s211_s10 = scalar_lea.sflag [#allocation6], %s940_s5 }
  0x3b   : > { %s1181_s24 = scalar_select %p989_p7, 1, 0 }
  0x3c   : > { %s222_s6 = sshll.u32 %s214_s26, 4  ;;  %s661_s12 = scalar_lea.hbm %s998_s11, 64  ;;  %s223_s6 = int_to_ptr.vmem [resolvable:$true] %s222_s6 }
  0x3d   : > { %p662_p9 = scmp.ne.s32.totalorder %s998_s11, %s661_s12  ;;  %s666_s8 = scalar_lea.hbm %s1164_s1, 128 }
  0x3e   : > { %p667_p3 = scmp.lt.u32.totalorder %s998_s11, %s1164_s1  ;;  %p668_p6 = scmp.lt.u32.totalorder %s666_s8, %s661_s12 }
  0x3f   : > { %p664_p11 = pnand %p662_p9, %p633_p5  ;;  %p670_p10 = scmp.lt.u32.totalorder %s661_s12, %s998_s11 }
  0x40   : > { %p669_p4 = por %p668_p6, %p667_p3 }
  0x41   : > { %p665_p13 = pneg %p664_p11 }
  0x42   : > { %p671_p12 = por %p670_p10, %p669_p4 }
  0x44   : > { %p672_p1 = pnand %p671_p12, %p665_p13 }
  0x46   : > { %675 = shalt.err (!%p672_p1)
}
  0x47   : > { %s676_s5 = scalar_lea.vmem %s223_s6, 64  ;;  %s840_s25 = smov [#allocation5]  }
  0x48   : > { %p677_p2 = scmp.ne.s32.totalorder %s223_s6, %s676_s5  ;;  %s681_s22 = sshll.u32 %s840_s25, 4  ;;  %s682_s22 = int_to_ptr.vmem [resolvable:$false] %s681_s22 }
  0x49   : > { %s683_s26 = scalar_lea.vmem %s682_s22, 128  ;;  %p684_p8 = scmp.lt.s32.totalorder %s223_s6, %s682_s22 }
  0x4a   : > { %p679_p9 = pnand %p677_p2, %p633_p5  ;;  %p685_p7 = scmp.lt.s32.totalorder %s683_s26, %s676_s5 }
  0x4c   : > { %p680_p11 = pneg %p679_p9  ;;  %p686_p3 = por %p685_p7, %p684_p8 }
  0x4e   : > { %p687_p6 = pnand %p686_p3, %p680_p11 }
  0x50   : > { %690 = shalt.err (!%p687_p6)
}
  0x51   : > { %565 = dma.hbm_to_vmem [thread:$0]  (!%p953_p0), %s998_s11, 64, %s223_s6, %s211_s10  }
  0x52   : > { %p1182_p13 = scmp.ne.s32.totalorder %s1181_s24, 0 }
  0x53   : > { %s1023_s12 = sand.u32 (!%p1182_p13), 1, %s821_s16   ;;  %p1183_p8 = scmp.ne.s32.totalorder (!%p1182_p13), %s1174_s27, 0 }
  0x54   : > { %231 = sbr.rel (%p1182_p13) target bundleno = 182 (0xb6), region = 28  ;;  %s1026_s14 = sshll.u32 (!%p1182_p13), %s1023_s12, 3 }
  0x55   : > { %s234_s8 = scalar_lea.sflag (!%p1182_p13), [#allocation3], %s1023_s12  ;;  %s237_s7 = scalar_lea.vmem (!%p1182_p13), [#allocation2], %s1026_s14 }
  0x5b   : > { %800 = dma.done.wait (%p1183_p8), %s234_s8, 128  }
  0x5c   : > { %802 = vsyncadd (%p1183_p8), %s234_s8, 4294967168  ;;  %s536_s13 = sshll.u32 %s1023_s12, 2  ;;  %s243_s24 = scalar_lea.sflag [#allocation6], %s1023_s12 }
  0x5d   : > { %s246_s11 = scalar_lea.vmem [#allocation5], %s536_s13 }
  0x5e   : > { %804 = dma.done.wait (%p1183_p8), %s243_s24, 64  }
  0x5f   : > { %806 = vsyncadd (%p1183_p8), %s243_s24, 4294967232  ;;  %v293_v0 = vld [vmem:[%s237_s7] sm:$0xff]  ;;  %v294_v1 = vld [vmem:[%s246_s11] sm:$0xf]  ;;  %s285_s6 = scalar_lea.vmem [#allocation10], %s1026_s14  ;;  %s317_s10 = sand.u32 1, %s900_s21  }
  0x60   : > { %v540_v2 = vmul.f32 -1.442695, %v293_v0  ;;  %v295_v3 = vunpack.c.l.bf16 %v294_v1  ;;  %s362_s9 = sshll.u32 %s285_s6, 4  ;;  %s544_s27 = sshll.u32 %s829_s18, 7  ;;  %s1044_s9 = int_to_ptr.vmem [resolvable:$true] %s362_s9 }
  0x61   : > { %s278_s5 = scalar_lea.vmem [#allocation8], %s1026_s14  ;;  %s1171_s22 = scalar_lea.vmem [#allocation7], %s1026_s14 }
  0x62   : > { %627 = vpow2.f32 %v540_v2  ;;  %311 = vst [vmem:[%s285_s6] sm:$0xff] %v295_v3  ;;  %s349_s25 = sshll.u32 %s278_s5, 4  ;;  %s336_s26 = sshll.u32 %s1171_s22, 4  ;;  %s1054_s25 = int_to_ptr.vmem [resolvable:$true] %s349_s25  ;;  %s1066_s26 = int_to_ptr.vmem [resolvable:$true] %s336_s26 }
  0x63   : > { %s1052_s13 = scalar_lea.hbm %s1166_s3, %s544_s27  ;;  %s1059_s18 = scalar_lea.hbm %s1167_s4, %s544_s27 }
  0x64   : > { %s1064_s22 = scalar_lea.hbm %s1165_s2, %s544_s27  ;;  %s1068_s8 = scalar_lea.sflag [#allocation9], %s317_s10 }
  0x65   : > { %s691_s7 = scalar_lea.vmem %s1054_s25, 128  ;;  %p1184_p5 = scmp.ne.s32.totalorder %s1175_s28, 0 }
  0x66   : > { %p692_p0 = scmp.ne.s32.totalorder %s1054_s25, %s691_s7  ;;  %s841_s21 = smov [#allocation8]  }
  0x67   : > { %s695_s24 = sshll.u32 %s841_s21, 4  ;;  %s696_s24 = int_to_ptr.vmem [resolvable:$false] %s695_s24 }
  0x68   : > { %p693_p7 = pnand %p692_p0, %p1184_p5  ;;  %s697_s0 = scalar_lea.vmem %s696_s24, 256 }
  0x69   : > { %p698_p10 = scmp.lt.s32.totalorder %s1054_s25, %s696_s24  ;;  %p699_p12 = scmp.lt.s32.totalorder %s697_s0, %s691_s7 }
  0x6a   : > { %p694_p4 = pneg %p693_p7 }
  0x6b   : > { %p700_p1 = por %p699_p12, %p698_p10 }
  0x6c   : > { %v628_v4 = vpop.eup %627 }
  0x6d   : > { %v299_v5 = vadd.f32 1.0, %v628_v4  ;;  %p701_p2 = pnand %p700_p1, %p694_p4 }
  0x6f   : > { %629 = vrcp.f32 %v299_v5 }
  0x79   : > { %v630_v6 = vpop.eup %629 }
  0x7a   : > { %v302_v7 = vmul.f32 %v630_v6, %v295_v3  ;;  %308 = vst [vmem:[%s278_s5] sm:$0xff] %v630_v6 }
  0x7b   : > { %704 = shalt.err (!%p701_p2)
}
  0x7c   : > { %s705_s10 = scalar_lea.hbm %s1052_s13, 128  ;;  %s709_s11 = scalar_lea.hbm %s1166_s3, 256 }
  0x7d   : > { %p706_p9 = scmp.ne.s32.totalorder %s1052_s13, %s705_s10  ;;  %p710_p6 = scmp.lt.u32.totalorder %s1052_s13, %s1166_s3 }
  0x7e   : > { %p711_p13 = scmp.lt.u32.totalorder %s709_s11, %s705_s10  ;;  %p713_p0 = scmp.lt.u32.totalorder %s705_s10, %s1052_s13 }
  0x7f   : > { %p707_p11 = pnand %p706_p9, %p1184_p5 }
  0x80   : > { %p712_p8 = por %p711_p13, %p710_p6 }
  0x81   : > { %p708_p3 = pneg %p707_p11 }
  0x82   : > { %p714_p7 = por %p713_p0, %p712_p8 }
  0x84   : > { %p715_p4 = pnand %p714_p7, %p708_p3 }
  0x86   : > { %718 = shalt.err (!%p715_p4)
}
  0x87   : > { %554 = dma.vmem_to_hbm [thread:$0]  (%p1184_p5), %s1054_s25, 128, %s1052_s13, %s1068_s8  }
  0x88   : > { %s1185_s0 = scalar_lea.vmem [#allocation7], %s1026_s14  ;;  %s719_s7 = scalar_lea.vmem %s1044_s9, 128 }
  0x89   : > { %305 = vst [vmem:[%s1185_s0] sm:$0xff] %v302_v7  ;;  %p720_p10 = scmp.ne.s32.totalorder %s1044_s9, %s719_s7  ;;  %s842_s24 = smov [#allocation10]  }
  0x8a   : > { %s723_s10 = sshll.u32 %s842_s24, 4  ;;  %s724_s10 = int_to_ptr.vmem [resolvable:$false] %s723_s10 }
  0x8b   : > { %p721_p12 = pnand %p720_p10, %p1184_p5  ;;  %s725_s27 = scalar_lea.vmem %s724_s10, 256 }
  0x8c   : > { %p726_p2 = scmp.lt.s32.totalorder %s1044_s9, %s724_s10  ;;  %p727_p9 = scmp.lt.s32.totalorder %s725_s27, %s719_s7 }
  0x8d   : > { %p722_p1 = pneg %p721_p12 }
  0x8e   : > { %p728_p11 = por %p727_p9, %p726_p2 }
  0x90   : > { %p729_p3 = pnand %p728_p11, %p722_p1 }
  0x92   : > { %732 = shalt.err (!%p729_p3)
}
  0x93   : > { %s733_s14 = scalar_lea.hbm %s1059_s18, 128  ;;  %s737_s5 = scalar_lea.hbm %s1167_s4, 256 }
  0x94   : > { %p734_p6 = scmp.ne.s32.totalorder %s1059_s18, %s733_s14  ;;  %p738_p0 = scmp.lt.u32.totalorder %s1059_s18, %s1167_s4 }
  0x95   : > { %p739_p7 = scmp.lt.u32.totalorder %s737_s5, %s733_s14  ;;  %p741_p10 = scmp.lt.u32.totalorder %s733_s14, %s1059_s18 }
  0x96   : > { %p735_p13 = pnand %p734_p6, %p1184_p5 }
  0x97   : > { %p740_p4 = por %p739_p7, %p738_p0 }
  0x98   : > { %p736_p8 = pneg %p735_p13 }
  0x99   : > { %p742_p12 = por %p741_p10, %p740_p4 }
  0x9b   : > { %p743_p1 = pnand %p742_p12, %p736_p8 }
  0x9d   : > { %746 = shalt.err (!%p743_p1)
}
  0x9e   : > { %555 = dma.vmem_to_hbm [thread:$0]  (%p1184_p5), %s1044_s9, 128, %s1059_s18, %s1068_s8  }
  0x9f   : > { %s313_s21 = scalar_lea.sflag [#allocation4], %s1023_s12  ;;  %s747_s0 = scalar_lea.vmem %s1066_s26, 128 }
  0xa0   : > { %p748_p2 = scmp.ne.s32.totalorder %s1066_s26, %s747_s0  ;;  %s843_s7 = smov [#allocation7]  }
  0xa1   : > { %s751_s24 = sshll.u32 %s843_s7, 4  ;;  %s752_s24 = int_to_ptr.vmem [resolvable:$false] %s751_s24 }
  0xa2   : > { %p749_p9 = pnand %p748_p2, %p1184_p5  ;;  %s753_s10 = scalar_lea.vmem %s752_s24, 256 }
  0xa3   : > { %p754_p3 = scmp.lt.s32.totalorder %s1066_s26, %s752_s24  ;;  %p755_p6 = scmp.lt.s32.totalorder %s753_s10, %s747_s0 }
  0xa4   : > { %p750_p11 = pneg %p749_p9 }
  0xa5   : > { %p756_p13 = por %p755_p6, %p754_p3 }
  0xa7   : > { %p757_p8 = pnand %p756_p13, %p750_p11 }
  0xa9   : > { %760 = shalt.err (!%p757_p8)
}
  0xaa   : > { %s761_s12 = scalar_lea.hbm %s1064_s22, 128  ;;  %s765_s8 = scalar_lea.hbm %s1165_s2, 256 }
  0xab   : > { %p762_p0 = scmp.ne.s32.totalorder %s1064_s22, %s761_s12  ;;  %p766_p10 = scmp.lt.u32.totalorder %s1064_s22, %s1165_s2 }
  0xac   : > { %p767_p12 = scmp.lt.u32.totalorder %s765_s8, %s761_s12  ;;  %p769_p2 = scmp.lt.u32.totalorder %s761_s12, %s1064_s22 }
  0xad   : > { %p763_p7 = pnand %p762_p0, %p1184_p5 }
  0xae   : > { %p768_p1 = por %p767_p12, %p766_p10 }
  0xaf   : > { %p764_p4 = pneg %p763_p7 }
  0xb0   : > { %p770_p9 = por %p769_p2, %p768_p1 }
  0xb2   : > { %p771_p11 = pnand %p770_p9, %p764_p4 }
  0xb4   : > { %774 = shalt.err (!%p771_p11)
}
  0xb5   : > { %553 = dma.vmem_to_hbm [thread:$0]  (%p1184_p5), %s1066_s26, 128, %s1064_s22, %s313_s21  }
  0xb6 PF: > { %s374_s25 = sand.u32 1, %s817_s15   ;;  %p1186_p3 = scmp.ne.s32.totalorder %s1176_s30, 0 }
  0xb7   : > { %p1187_p6 = scmp.ge.s32.totalorder %s837_s20, 2  ;;  %s375_s13 = scalar_lea.sflag [#allocation4], %s374_s25 }
  0xb9   : > { %p567_p13 = pnand %p1187_p6, %p1186_p3 }
  0xbb   : > { %808 = dma.done.wait (!%p567_p13), %s375_s13, 128  }
  0xbc   : > { %810 = vsyncadd (!%p567_p13), %s375_s13, 4294967168  ;;  %s1188_s5 = sadd.s32 4294967294, %s837_s20  }
  0xbd   : > { %s383_s11 = sand.u32 1, %s1188_s5  }
  0xbe   : > { %s384_s6 = scalar_lea.sflag [#allocation9], %s383_s11 }
  0xbf   : > { %812 = dma.done.wait (!%p567_p13), %s384_s6, 256  }
  0xc0   : > { %814 = vsyncadd (!%p567_p13), %s384_s6, 4294967040  ;;  %s27_s20 = sadd.s32 1, %s837_s20   ;;  %s1189_s15 = smov %s821_s16 }
  0xc1   : > { %p24_p5 = scmp.ge.s32.totalorder %s27_s20, 4   ;;  %s1190_s16 = smov %s825_s17 }
  0xc2   : > { %s1191_s17 = smov %s931_s29  ;;  %s1192_s18 = smov %s833_s19 }
  0xc3   : > { %s1193_s19 = smov %s1195_s23  ;;  %26 = sbr.rel (!%p24_p5) target bundleno = 12 (0xc), region = 122 }
  0xca   :  { %398 = vsyncpa [#allocation3], 1 }
  0xcb   :  { %400 = vsyncpa [#allocation3 + $0x1], 1 }
  0xcc   :  { %401 = vsyncpa [#allocation6], 1 }
  0xcd   :  { %403 = vsyncpa [#allocation6 + $0x1], 1 }
  0xce   :  { %404 = vsyncpa [#allocation4], 1 }
  0xcf   :  { %406 = vsyncpa [#allocation4 + $0x1], 1 }
  0xd0   :  { %407 = vsyncpa [#allocation9], 1 }
  0xd1   :  { %409 = vsyncpa [#allocation9 + $0x1], 1 }

</bundles_post_ra>
